<compile_context>
chip_gen: v5e
topology: v5e:2x2
jax: 0.10.0
libtpu: 0.0.40
codegen_flags: <defaults>
</compile_context>

<pallas_src>
import functools

import jax
import jax.numpy as jnp
from jax.experimental import pallas as pl
from jax.experimental.pallas import tpu as pltpu


def _pos_embed_kernel(tbl_ref, out_ref, *, H, W, Dh):
    # tbl_ref: (H + W, Dh)  -- rows [0:H] = row table, rows [H:H+W] = col table
    # out_ref: (H, W * 2*Dh) lane-dense slab; out[i, j*D + k] = row[i, k] (k < Dh)
    #                                                        = col[j, k-Dh] (k >= Dh)
    row = tbl_ref[pl.ds(0, H), :]          # (H, Dh)
    col = tbl_ref[pl.ds(H, W), :]          # (W, Dh)

    blocks = []
    for j in range(W):                     # static unroll (W is small)
        blocks.append(row)                                            # row half, reused value
        blocks.append(jnp.broadcast_to(col[j:j + 1, :], (H, Dh)))     # col half for column j
    # Single full-width (16 x 512) store: unmasked vst, no lane slicing.
    out_ref[...] = jnp.concatenate(blocks, axis=-1)


def learned_2d_pos_embed(row_weight: jax.Array, col_weight: jax.Array) -> jax.Array:
    """row_weight: (H, D/2), col_weight: (W, D/2) -> (H*W, D)."""
    H, Dh = row_weight.shape
    W, Dh2 = col_weight.shape
    assert Dh == Dh2
    D = 2 * Dh

    # Merge the two tiny tables into one input -> one DMA instead of two.
    tbl = jnp.concatenate([row_weight, col_weight], axis=0)   # (H + W, Dh)

    kernel = functools.partial(_pos_embed_kernel, H=H, W=W, Dh=Dh)

    out_slab = pl.pallas_call(
        kernel,
        out_shape=jax.ShapeDtypeStruct((H, W * D), row_weight.dtype),
        grid=(1,),
        in_specs=[
            pl.BlockSpec((H + W, Dh), lambda i: (0, 0)),
        ],
        out_specs=pl.BlockSpec((H, W * D), lambda i: (0, 0)),
        compiler_params=pltpu.CompilerParams(
            dimension_semantics=("arbitrary",),
        ),
    )(tbl)

    # (H, W*D) -> (H*W, D) is a contiguous row-major collapse: free reshape.
    return out_slab.reshape(H * W, D)


if __name__ == "__main__":
    # Module config (small): model_dim=32, height=16, width=16
    model_dim, height, width = 32, 16, 16
    half = model_dim // 2

    key = jax.random.PRNGKey(0)
    k_row, k_col = jax.random.split(key)
    # nn.init.uniform_ -> U[0, 1)
    row_weight = jax.random.uniform(k_row, (height, half), dtype=jnp.float32)
    col_weight = jax.random.uniform(k_col, (width, half), dtype=jnp.float32)

    pos = learned_2d_pos_embed(row_weight, col_weight)
    pos = jax.block_until_ready(pos)

    # Pure-JAX reference check
    ref = jnp.concatenate(
        [
            jnp.broadcast_to(row_weight[:, None, :], (height, width, half)),
            jnp.broadcast_to(col_weight[None, :, :], (height, width, half)),
        ],
        axis=-1,
    ).reshape(height * width, model_dim)

    assert pos.shape == (height * width, model_dim), pos.shape
    assert jnp.allclose(pos, ref), "mismatch vs reference"
    print("KERNEL_OK")
</pallas_src>

<mosaic_0001>
module attributes {stable_mosaic.version = 11 : i64} {
  func.func @_pos_embed_kernel(%arg0: i32, %arg1: memref<32x16xf32, #tpu.memory_space<vmem>>, %arg2: memref<16x512xf32, #tpu.memory_space<vmem>>) attributes {dimension_semantics = [#tpu.dimension_semantics<arbitrary>], iteration_bounds = array<i64: 1>, scalar_prefetch = 0 : i64, scratch_operands = 0 : i64, tpu.core_type = #tpu.core_type<tc>, window_params = [{pipeline_mode = #tpu.pipeline_mode<synchronous>, transform_indices = @transform_0, window_bounds = array<i64: 32, 16>}, {pipeline_mode = #tpu.pipeline_mode<synchronous>, transform_indices = @transform_1, window_bounds = array<i64: 16, 512>}]} {
    %c0 = arith.constant 0 : index
    %c0_0 = arith.constant 0 : index
    %0 = vector.load %arg1[%c0, %c0_0] : memref<32x16xf32, #tpu.memory_space<vmem>>, vector<16x16xf32>
    %c16 = arith.constant 16 : index
    %c0_1 = arith.constant 0 : index
    %1 = vector.load %arg1[%c16, %c0_1] : memref<32x16xf32, #tpu.memory_space<vmem>>, vector<16x16xf32>
    %2 = vector.extract_strided_slice %1 {offsets = [0, 0], sizes = [1, 16], strides = [1, 1]} : vector<16x16xf32> to vector<1x16xf32>
    %3 = vector.shape_cast %2 : vector<1x16xf32> to vector<1x16xf32>
    %4 = vector.broadcast %3 : vector<1x16xf32> to vector<16x16xf32>
    %5 = vector.extract_strided_slice %1 {offsets = [1, 0], sizes = [1, 16], strides = [1, 1]} : vector<16x16xf32> to vector<1x16xf32>
    %6 = vector.shape_cast %5 : vector<1x16xf32> to vector<1x16xf32>
    %7 = vector.broadcast %6 : vector<1x16xf32> to vector<16x16xf32>
    %8 = vector.extract_strided_slice %1 {offsets = [2, 0], sizes = [1, 16], strides = [1, 1]} : vector<16x16xf32> to vector<1x16xf32>
    %9 = vector.shape_cast %8 : vector<1x16xf32> to vector<1x16xf32>
    %10 = vector.broadcast %9 : vector<1x16xf32> to vector<16x16xf32>
    %11 = vector.extract_strided_slice %1 {offsets = [3, 0], sizes = [1, 16], strides = [1, 1]} : vector<16x16xf32> to vector<1x16xf32>
    %12 = vector.shape_cast %11 : vector<1x16xf32> to vector<1x16xf32>
    %13 = vector.broadcast %12 : vector<1x16xf32> to vector<16x16xf32>
    %14 = vector.extract_strided_slice %1 {offsets = [4, 0], sizes = [1, 16], strides = [1, 1]} : vector<16x16xf32> to vector<1x16xf32>
    %15 = vector.shape_cast %14 : vector<1x16xf32> to vector<1x16xf32>
    %16 = vector.broadcast %15 : vector<1x16xf32> to vector<16x16xf32>
    %17 = vector.extract_strided_slice %1 {offsets = [5, 0], sizes = [1, 16], strides = [1, 1]} : vector<16x16xf32> to vector<1x16xf32>
    %18 = vector.shape_cast %17 : vector<1x16xf32> to vector<1x16xf32>
    %19 = vector.broadcast %18 : vector<1x16xf32> to vector<16x16xf32>
    %20 = vector.extract_strided_slice %1 {offsets = [6, 0], sizes = [1, 16], strides = [1, 1]} : vector<16x16xf32> to vector<1x16xf32>
    %21 = vector.shape_cast %20 : vector<1x16xf32> to vector<1x16xf32>
    %22 = vector.broadcast %21 : vector<1x16xf32> to vector<16x16xf32>
    %23 = vector.extract_strided_slice %1 {offsets = [7, 0], sizes = [1, 16], strides = [1, 1]} : vector<16x16xf32> to vector<1x16xf32>
    %24 = vector.shape_cast %23 : vector<1x16xf32> to vector<1x16xf32>
    %25 = vector.broadcast %24 : vector<1x16xf32> to vector<16x16xf32>
    %26 = vector.extract_strided_slice %1 {offsets = [8, 0], sizes = [1, 16], strides = [1, 1]} : vector<16x16xf32> to vector<1x16xf32>
    %27 = vector.shape_cast %26 : vector<1x16xf32> to vector<1x16xf32>
    %28 = vector.broadcast %27 : vector<1x16xf32> to vector<16x16xf32>
    %29 = vector.extract_strided_slice %1 {offsets = [9, 0], sizes = [1, 16], strides = [1, 1]} : vector<16x16xf32> to vector<1x16xf32>
    %30 = vector.shape_cast %29 : vector<1x16xf32> to vector<1x16xf32>
    %31 = vector.broadcast %30 : vector<1x16xf32> to vector<16x16xf32>
    %32 = vector.extract_strided_slice %1 {offsets = [10, 0], sizes = [1, 16], strides = [1, 1]} : vector<16x16xf32> to vector<1x16xf32>
    %33 = vector.shape_cast %32 : vector<1x16xf32> to vector<1x16xf32>
    %34 = vector.broadcast %33 : vector<1x16xf32> to vector<16x16xf32>
    %35 = vector.extract_strided_slice %1 {offsets = [11, 0], sizes = [1, 16], strides = [1, 1]} : vector<16x16xf32> to vector<1x16xf32>
    %36 = vector.shape_cast %35 : vector<1x16xf32> to vector<1x16xf32>
    %37 = vector.broadcast %36 : vector<1x16xf32> to vector<16x16xf32>
    %38 = vector.extract_strided_slice %1 {offsets = [12, 0], sizes = [1, 16], strides = [1, 1]} : vector<16x16xf32> to vector<1x16xf32>
    %39 = vector.shape_cast %38 : vector<1x16xf32> to vector<1x16xf32>
    %40 = vector.broadcast %39 : vector<1x16xf32> to vector<16x16xf32>
    %41 = vector.extract_strided_slice %1 {offsets = [13, 0], sizes = [1, 16], strides = [1, 1]} : vector<16x16xf32> to vector<1x16xf32>
    %42 = vector.shape_cast %41 : vector<1x16xf32> to vector<1x16xf32>
    %43 = vector.broadcast %42 : vector<1x16xf32> to vector<16x16xf32>
    %44 = vector.extract_strided_slice %1 {offsets = [14, 0], sizes = [1, 16], strides = [1, 1]} : vector<16x16xf32> to vector<1x16xf32>
    %45 = vector.shape_cast %44 : vector<1x16xf32> to vector<1x16xf32>
    %46 = vector.broadcast %45 : vector<1x16xf32> to vector<16x16xf32>
    %47 = vector.extract_strided_slice %1 {offsets = [15, 0], sizes = [1, 16], strides = [1, 1]} : vector<16x16xf32> to vector<1x16xf32>
    %48 = vector.shape_cast %47 : vector<1x16xf32> to vector<1x16xf32>
    %49 = vector.broadcast %48 : vector<1x16xf32> to vector<16x16xf32>
    %50 = tpu.concatenate %0, %4, %0, %7, %0, %10, %0, %13, %0, %16, %0, %19, %0, %22, %0, %25 in 1 : vector<16x16xf32>, vector<16x16xf32>, vector<16x16xf32>, vector<16x16xf32>, vector<16x16xf32>, vector<16x16xf32>, vector<16x16xf32>, vector<16x16xf32>, vector<16x16xf32>, vector<16x16xf32>, vector<16x16xf32>, vector<16x16xf32>, vector<16x16xf32>, vector<16x16xf32>, vector<16x16xf32>, vector<16x16xf32> -> vector<16x256xf32>
    %51 = tpu.concatenate %0, %28, %0, %31, %0, %34, %0, %37, %0, %40, %0, %43, %0, %46, %0, %49 in 1 : vector<16x16xf32>, vector<16x16xf32>, vector<16x16xf32>, vector<16x16xf32>, vector<16x16xf32>, vector<16x16xf32>, vector<16x16xf32>, vector<16x16xf32>, vector<16x16xf32>, vector<16x16xf32>, vector<16x16xf32>, vector<16x16xf32>, vector<16x16xf32>, vector<16x16xf32>, vector<16x16xf32>, vector<16x16xf32> -> vector<16x256xf32>
    %52 = tpu.concatenate %50, %51 in 1 : vector<16x256xf32>, vector<16x256xf32> -> vector<16x512xf32>
    %c0_2 = arith.constant 0 : index
    %c0_3 = arith.constant 0 : index
    %53 = vector.load %arg2[%c0_2, %c0_3] : memref<16x512xf32, #tpu.memory_space<vmem>>, vector<16x512xf32>
    tpu.vector_store %arg2[%c0_2, %c0_3], %52 {strides = array<i32>} : memref<16x512xf32, #tpu.memory_space<vmem>>, vector<16x512xf32>,
    return
  }
  func.func @transform_0(%arg0: i32) -> (i32, i32) {
    %c0_i32 = arith.constant 0 : i32
    %c0_i32_0 = arith.constant 0 : i32
    %c0_i32_1 = arith.constant 0 : i32
    return %c0_i32, %c0_i32_0 : i32, i32
  }
  func.func @transform_1(%arg0: i32) -> (i32, i32) {
    %c0_i32 = arith.constant 0 : i32
    %c0_i32_0 = arith.constant 0 : i32
    %c0_i32_1 = arith.constant 0 : i32
    return %c0_i32, %c0_i32_0 : i32, i32
  }
}

</mosaic_0001>

<bundles_post_ra>
// kernel: tpu_custom_call.1
= control target key start
LH: loop header
LB: loop body
LE: loop exit
PB: predicated region body
PF: predicated region fallthrough
CT: control target
= control target key end

     0   :  { %s237_s12 = smov 32   ;;  %s238_s13 = smov 64   ;;  %s372_s0 = inlined_call_operand.vmem [shape: f32[32,16], index: 0, kind: input, shape index: {}]   ;;  %s373_s1 = inlined_call_operand.hbm [shape: f32[16,512], index: 1, kind: output, shape index: {}]  }
   0x1   :  { %v259_v0 = vld [vmem:[%s372_s0 + $0x8] sm:$0xff]  ;;  %v264_v1 = vld [vmem:[%s372_s0] sm:$0xff]  ;;  %v11_v2 = vld [vmem:[%s372_s0 + $0x10] sm:$0xff]  ;;  %s239_s14 = smov 16  }
   0x2   :  { %37 = vrot.lane.b32.xlu1 %v259_v0, %s237_s12  ;;  %45 = vrot.lane.b32.xlu2 %v264_v1, %s238_s13  ;;  %v13_v3 = vperm.slane %v11_v2, 0 }
   0x4   :  { %30 = vrot.lane.b32.xlu0 %v13_v3, %s239_s14 }
   0x5   :  { %6 = vsyncpa [#allocation3], 0  ;;  %v14_v4 = vperm.slane %v11_v2, 1  ;;  %s240_s15 = smov 48   ;;  %v12_v5 = vld [vmem:[%s372_s0 + $0x18] sm:$0xff]  ;;  %v17_v6 = vperm.slane %v11_v2, 4 }
   0x6   :  { %v21_v7 = vperm.slane %v12_v5, 0  ;;  %v15_v8 = vperm.slane %v11_v2, 2  ;;  %s241_s18 = smov 80   ;;  %v18_v9 = vperm.slane %v11_v2, 5  ;;  %v22_v10 = vperm.slane %v12_v5, 1  ;;  %s242_s0 = smov 96  }
   0x7   :  { %v25_v11 = vperm.slane %v12_v5, 4  ;;  %v19_v12 = vperm.slane %v11_v2, 6  ;;  %v23_v13 = vperm.slane %v12_v5, 2  ;;  %v26_v14 = vperm.slane %v12_v5, 5  ;;  %s243_s19 = smov 112   ;;  %s244_s20 = smov [#allocation2]  }
   0x8   :  { %v27_v15 = vperm.slane %v12_v5, 6  ;;  %v20_v16 = vperm.slane %v11_v2, 7  ;;  %v24_v17 = vperm.slane %v12_v5, 3  ;;  %v16_v18 = vperm.slane %v11_v2, 3  ;;  %s188_s21 = sshll.u32 %s244_s20, 4  ;;  %s190_s24 = sshll.u32 %s373_s1, 4  ;;  %s189_s21 = int_to_ptr.vmem [resolvable:$true] %s188_s21  ;;  %s191_s24 = int_to_ptr.hbm [resolvable:$true] %s190_s24 }
   0x9   :  { %v28_v19 = vperm.slane %v12_v5, 7  ;;  %vm81_vm0 = vcmask 130048   ;;  %vm84_vm1 = vcmask 261120   ;;  %vm87_vm2 = vcmask 392192   ;;  %s245_s25 = smov 512  }
   0xa   :  { %42 = vrot.lane.b32.xlu1 %v14_v4, %s240_s15  ;;  %47 = vrot.lane.b32.xlu2 %v259_v0, %s238_s13  ;;  %vm90_vm3 = vcmask 523264   ;;  %vm93_vm4 = vcmask 654336   ;;  %vm96_vm5 = vcmask 785408   ;;  %vm99_vm6 = vcmask 916480  }
   0xc   :  { %35 = vrot.lane.b32.xlu0 %v264_v1, %s237_s12 }
  0x12   :  { %66 = vrot.lane.b32.xlu1 %v17_v6, %s239_s14  ;;  %117 = vrot.lane.b32.xlu2 %v21_v7, %s239_s14 }
  0x14   :  { %52 = vrot.lane.b32.xlu0 %v15_v8, %s241_s18 }
  0x1a   :  { %70 = vrot.lane.b32.xlu1 %v18_v9, %s240_s15  ;;  %121 = vrot.lane.b32.xlu2 %v22_v10, %s240_s15 }
  0x1c   :  { %133 = vrot.lane.b32.xlu0 %v25_v11, %s239_s14 }
  0x22   :  { %74 = vrot.lane.b32.xlu1 %v19_v12, %s241_s18  ;;  %125 = vrot.lane.b32.xlu2 %v23_v13, %s241_s18 }
  0x24   :  { %137 = vrot.lane.b32.xlu0 %v26_v14, %s240_s15 }
  0x2a   :  { %55 = vrot.lane.b32.xlu1 %v264_v1, %s242_s0  ;;  %57 = vrot.lane.b32.xlu2 %v259_v0, %s242_s0 }
  0x2c   :  { %141 = vrot.lane.b32.xlu0 %v27_v15, %s241_s18 }
  0x32   :  { %78 = vrot.lane.b32.xlu1 %v20_v16, %s243_s19  ;;  %129 = vrot.lane.b32.xlu2 %v24_v17, %s243_s19 }
  0x34   :  { %62 = vrot.lane.b32.xlu0 %v16_v18, %s243_s19 }
  0x3c   :  { %145 = vrot.lane.b32.xlu0 %v28_v19, %s243_s19 }
  0x5c   :  { %v280_v20 = vpop.permute.xlu2 %45 }
  0x64   :  { %v282_v21 = vpop.permute.xlu2 %47 }
  0x6c   :  { %v118_v22 = vpop.permute.xlu2 %117 }
  0x6d   :  { %v149_v29 = vsel %vm81_vm0, %v259_v0, %v118_v22  ;;  %v148_v42 = vsel %vm81_vm0, %v264_v1, %v118_v22 }
  0x74   :  { %v284_v23 = vpop.permute.xlu1 %37  ;;  %v122_v24 = vpop.permute.xlu2 %121 }
  0x75   :  { %v151_v30 = vsel %vm84_vm1, %v149_v29, %v284_v23 }
  0x76   :  { %v31_v25 = vpop.permute.xlu0 %30  ;;  %v153_v33 = vsel %vm87_vm2, %v151_v30, %v122_v24 }
  0x77   :  { %v155_v35 = vsel %vm90_vm3, %v153_v33, %v282_v21  ;;  %v83_v49 = vsel %vm81_vm0, %v259_v0, %v31_v25  ;;  %v82_v54 = vsel %vm81_vm0, %v264_v1, %v31_v25 }
  0x78   :  { %v86_v57 = vsel %vm84_vm1, %v83_v49, %v284_v23 }
  0x7c   :  { %v43_v26 = vpop.permute.xlu1 %42  ;;  %v126_v27 = vpop.permute.xlu2 %125 }
  0x7d   :  { %v157_v36 = vsel %vm93_vm4, %v155_v35, %v126_v27  ;;  %v89_v62 = vsel %vm87_vm2, %v86_v57, %v43_v26 }
  0x7e   :  { %v36_v28 = vpop.permute.xlu0 %35  ;;  %v92_v5 = vsel %vm90_vm3, %v89_v62, %v282_v21 }
  0x7f   :  { %v150_v43 = vsel %vm84_vm1, %v148_v42, %v36_v28  ;;  %v85_v58 = vsel %vm84_vm1, %v82_v54, %v36_v28 }
  0x80   :  { %v152_v45 = vsel %vm87_vm2, %v150_v43, %v122_v24  ;;  %v88_v3 = vsel %vm87_vm2, %v85_v58, %v43_v26 }
  0x81   :  { %v154_v48 = vsel %vm90_vm3, %v152_v45, %v280_v20  ;;  %v91_v11 = vsel %vm90_vm3, %v88_v3, %v280_v20 }
  0x82   :  { %v156_v53 = vsel %vm93_vm4, %v154_v48, %v126_v27 }
  0x84   :  { %v67_v31 = vpop.permute.xlu1 %66  ;;  %v290_v32 = vpop.permute.xlu2 %57 }
  0x85   :  { %v159_v38 = vsel %vm96_vm5, %v157_v36, %v290_v32  ;;  %v103_v47 = vsel %vm81_vm0, %v259_v0, %v67_v31  ;;  %v102_v50 = vsel %vm81_vm0, %v264_v1, %v67_v31 }
  0x86   :  { %v53_v34 = vpop.permute.xlu0 %52  ;;  %v105_v51 = vsel %vm84_vm1, %v103_v47, %v284_v23  ;;  %v104_v59 = vsel %vm84_vm1, %v102_v50, %v36_v28 }
  0x87   :  { %v95_v7 = vsel %vm93_vm4, %v92_v5, %v53_v34  ;;  %v94_v15 = vsel %vm93_vm4, %v91_v11, %v53_v34 }
  0x88   :  { %v98_v18 = vsel %vm96_vm5, %v95_v7, %v290_v32 }
  0x8c   :  { %v71_v37 = vpop.permute.xlu1 %70  ;;  %v130_v39 = vpop.permute.xlu2 %129 }
  0x8d   :  { %v161_v40 = vsel %vm99_vm6, %v159_v38, %v130_v39  ;;  %v107_v55 = vsel %vm87_vm2, %v105_v51, %v71_v37  ;;  %v106_v63 = vsel %vm87_vm2, %v104_v59, %v71_v37 }
  0x8e   :  { %182 = vst [vmem:[#allocation2 + $0x30] sm:$0xff] %v161_v40  ;;  %v134_v41 = vpop.permute.xlu0 %133  ;;  %v109_v2 = vsel %vm90_vm3, %v107_v55, %v282_v21  ;;  %v108_v6 = vsel %vm90_vm3, %v106_v63, %v280_v20 }
  0x8f   :  { %v162_v8 = vsel %vm81_vm0, %v264_v1, %v134_v41  ;;  %v163_v9 = vsel %vm81_vm0, %v259_v0, %v134_v41 }
  0x90   :  { %v164_v17 = vsel %vm84_vm1, %v162_v8, %v36_v28  ;;  %v165_v0 = vsel %vm84_vm1, %v163_v9, %v284_v23 }
  0x94   :  { %v75_v44 = vpop.permute.xlu1 %74 }
  0x95   :  { %v111_v4 = vsel %vm93_vm4, %v109_v2, %v75_v44  ;;  %v110_v10 = vsel %vm93_vm4, %v108_v6, %v75_v44 }
  0x96   :  { %v138_v46 = vpop.permute.xlu0 %137  ;;  %v113_v14 = vsel %vm96_vm5, %v111_v4, %v290_v32 }
  0x97   :  { %v166_v24 = vsel %vm87_vm2, %v164_v17, %v138_v46  ;;  %v167_v25 = vsel %vm87_vm2, %v165_v0, %v138_v46 }
  0x98   :  { %v168_v23 = vsel %vm90_vm3, %v166_v24, %v280_v20  ;;  %v169_v28 = vsel %vm90_vm3, %v167_v25, %v282_v21 }
  0x9c   :  { %v56_v52 = vpop.permute.xlu1 %55 }
  0x9d   :  { %v158_v56 = vsel %vm96_vm5, %v156_v53, %v56_v52  ;;  %v112_v13 = vsel %vm96_vm5, %v110_v10, %v56_v52  ;;  %v97_v22 = vsel %vm96_vm5, %v94_v15, %v56_v52 }
  0x9e   :  { %v160_v60 = vsel %vm99_vm6, %v158_v56, %v130_v39  ;;  %v142_v61 = vpop.permute.xlu0 %141 }
  0x9f   :  { %178 = vst [vmem:[#allocation2 + $0x10] sm:$0xff] %v160_v60  ;;  %v170_v29 = vsel %vm93_vm4, %v168_v23, %v142_v61  ;;  %v171_v30 = vsel %vm93_vm4, %v169_v28, %v142_v61 }
  0xa0   :  { %v172_v31 = vsel %vm96_vm5, %v170_v29, %v56_v52  ;;  %v173_v33 = vsel %vm96_vm5, %v171_v30, %v290_v32 }
  0xa4   :  { %v79_v12 = vpop.permute.xlu1 %78 }
  0xa5   :  { %v114_v16 = vsel %vm99_vm6, %v112_v13, %v79_v12  ;;  %v115_v1 = vsel %vm99_vm6, %v113_v14, %v79_v12 }
  0xa6   :  { %177 = vst [vmem:[#allocation2 + $0x8] sm:$0xff] %v114_v16  ;;  %v63_v19 = vpop.permute.xlu0 %62 }
  0xa7   :  { %181 = vst [vmem:[#allocation2 + $0x28] sm:$0xff] %v115_v1  ;;  %v100_v26 = vsel %vm99_vm6, %v97_v22, %v63_v19  ;;  %v101_v27 = vsel %vm99_vm6, %v98_v18, %v63_v19 }
  0xa8   :  { %176 = vst [vmem:[#allocation2] sm:$0xff] %v100_v26 }
  0xa9   :  { %180 = vst [vmem:[#allocation2 + $0x20] sm:$0xff] %v101_v27 }
  0xae   :  { %v146_v34 = vpop.permute.xlu0 %145 }
  0xaf   :  { %v174_v20 = vsel %vm99_vm6, %v172_v31, %v146_v34  ;;  %v175_v21 = vsel %vm99_vm6, %v173_v33, %v146_v34 }
  0xb0   :  { %179 = vst [vmem:[#allocation2 + $0x18] sm:$0xff] %v174_v20 }
  0xb1   :  { %183 = vst [vmem:[#allocation2 + $0x38] sm:$0xff] %v175_v21 }
  0xb2   :  { %196 = dma.vmem_to_hbm [thread:$0]  %s189_s21, 1024, %s191_s24, [#allocation3], %s245_s25, %s245_s25, %s237_s12  }
  0xb3   :  { %235 = dma.done.wait [#allocation3], 1024  }
  0xb4   :  { %236 = vsyncadd [#allocation3], 4294966272 }
  0xb5   :  { %201 = vsyncpa [#allocation3], 1 }

</bundles_post_ra>
